<compile_context>
chip_gen: v5e
topology: v5e:2x2
jax: 0.10.0
libtpu: 0.0.40
codegen_flags: <defaults>
</compile_context>

<pallas_src>
import functools

import jax
import jax.numpy as jnp
from jax import lax
from jax.experimental import pallas as pl
from jax.experimental.pallas import tpu as pltpu

_LANES = 128


def _sse_partial_kernel(x_ref, y_ref, o_ref, *, block_rows, valid_rows, needs_mask):
    """Per-tile partial sum of squared errors, folded to an (8, 128) slab."""
    # In-kernel upcast: bf16/fp16 inputs stream from HBM at native width.
    d = x_ref[...].astype(jnp.float32) - y_ref[...].astype(jnp.float32)
    if needs_mask:
        # Rows past the valid extent (final partial tile) hold unspecified data;
        # zero them before squaring.  Static Python flag -> no cost when tiling
        # is exact.
        row0 = pl.program_id(0) * block_rows
        row_idx = lax.broadcasted_iota(jnp.int32, d.shape, 0)
        d = jnp.where(row_idx < (valid_rows - row0), d, 0.0)
    sq = d * d
    # Fold (block_rows, 128) -> (8, 128): pure VPU adds across vregs
    # (no XLU cross-lane reduce, no SMEM scalar read-modify-write).
    o_ref[...] = jnp.sum(sq.reshape(block_rows // 8, 8, _LANES), axis=0)


def _round_up(v, m):
    return ((v + m - 1) // m) * m


def mse_loss_sum(estimated_density_map, gt_map, *, block_rows=2048):
    """Equivalent to nn.MSELoss(size_average=False)(est, gt): sum((est - gt)**2)."""
    assert estimated_density_map.shape == gt_map.shape
    x = estimated_density_map.reshape(-1)
    y = gt_map.reshape(-1)
    n = x.shape[0]

    # Lane-dense 2D view.  Only pad (a copy) when n is not a multiple of 128;
    # both operands get identical zero padding so the sum is unchanged.
    rem = n % _LANES
    if rem:
        pad = _LANES - rem
        x = jnp.pad(x, (0, pad))
        y = jnp.pad(y, (0, pad))
    rows = x.shape[0] // _LANES
    x = x.reshape(rows, _LANES)
    y = y.reshape(rows, _LANES)

    # Sublane granularity depends on dtype packing (f32: 8, bf16/f16: 16, int8: 32).
    sub = {4: 8, 2: 16, 1: 32}
    min_sub = max(
        sub.get(jnp.dtype(x.dtype).itemsize, 8),
        sub.get(jnp.dtype(y.dtype).itemsize, 8),
    )
    # Tile rows: big by default, but never (much) bigger than the data.
    br = _round_up(min(block_rows, _round_up(rows, min_sub)), min_sub)
    br = max(br, min_sub)
    num_blocks = pl.cdiv(rows, br)
    needs_mask = (rows % br) != 0

    kernel = functools.partial(
        _sse_partial_kernel, block_rows=br, valid_rows=rows, needs_mask=needs_mask
    )

    partials = pl.pallas_call(
        kernel,
        out_shape=jax.ShapeDtypeStruct((num_blocks * 8, _LANES), jnp.float32),
        grid_spec=pltpu.PrefetchScalarGridSpec(
            num_scalar_prefetch=0,
            grid=(num_blocks,),
            in_specs=[
                pl.BlockSpec((br, _LANES), lambda i: (i, 0)),
                pl.BlockSpec((br, _LANES), lambda i: (i, 0)),
            ],
            out_specs=pl.BlockSpec((8, _LANES), lambda i: (i, 0)),
        ),
        compiler_params=pltpu.CompilerParams(
            # Fully parallel streaming reduction into per-tile partials; on v7x
            # Mosaic shards this axis across the two TensorCores.
            dimension_semantics=("parallel",),
        ),
    )(x, y)

    # Tiny final reduction (num_blocks * 8 * 128 f32) handled by XLA.
    return jnp.sum(partials)


if __name__ == "__main__":
    key = jax.random.PRNGKey(0)

    def ref_sse(a, b):
        return jnp.sum((a.astype(jnp.float32) - b.astype(jnp.float32)) ** 2)

    cases = [
        # (shape (NCHW), dtype, block_rows)
        ((2, 1, 32, 32), jnp.float32, 2048),   # density maps, exact tiling
        ((1, 1, 40, 36), jnp.float32, 2048),   # numel % 128 != 0 -> lane pad + row mask
        ((2, 1, 32, 32), jnp.bfloat16, 2048),  # in-kernel upcast path
        ((1, 1, 72, 128), jnp.float32, 32),    # multi-tile grid + partial last tile
    ]

    for idx, (shape, dtype, br) in enumerate(cases):
        k1, k2 = jax.random.split(jax.random.fold_in(key, idx))
        est = jax.random.uniform(k1, shape, dtype=jnp.float32).astype(dtype)
        gt = jax.random.uniform(k2, shape, dtype=jnp.float32).astype(dtype)

        got = jax.block_until_ready(mse_loss_sum(est, gt, block_rows=br))
        want = ref_sse(est, gt)
        assert jnp.allclose(got, want, rtol=1e-4, atol=1e-4), (shape, dtype, got, want)

    print("KERNEL_OK")
</pallas_src>

<mosaic_0001>
module attributes {stable_mosaic.version = 11 : i64} {
  func.func @_sse_partial_kernel(%arg0: i32, %arg1: memref<16x128xf32, #tpu.memory_space<vmem>>, %arg2: memref<16x128xf32, #tpu.memory_space<vmem>>, %arg3: memref<8x128xf32, #tpu.memory_space<vmem>>) attributes {dimension_semantics = [#tpu.dimension_semantics<parallel>], iteration_bounds = array<i64: 1>, scalar_prefetch = 0 : i64, scratch_operands = 0 : i64, tpu.core_type = #tpu.core_type<tc>, window_params = [{transform_indices = @transform_0, window_bounds = array<i64: 16, 128>}, {transform_indices = @transform_1, window_bounds = array<i64: 16, 128>}, {transform_indices = @transform_2, window_bounds = array<i64: 8, 128>}]} {
    %c0 = arith.constant 0 : index
    %c0_0 = arith.constant 0 : index
    %0 = vector.load %arg1[%c0, %c0_0] : memref<16x128xf32, #tpu.memory_space<vmem>>, vector<16x128xf32>
    %c0_1 = arith.constant 0 : index
    %c0_2 = arith.constant 0 : index
    %1 = vector.load %arg2[%c0_1, %c0_2] : memref<16x128xf32, #tpu.memory_space<vmem>>, vector<16x128xf32>
    %2 = arith.subf %0, %1 : vector<16x128xf32>
    %3 = arith.mulf %2, %2 : vector<16x128xf32>
    %4 = vector.shape_cast %3 : vector<16x128xf32> to vector<2x8x128xf32>
    %cst = arith.constant dense<0.000000e+00> : vector<8x128xf32>
    %5 = vector.multi_reduction <add>, %4, %cst [0] : vector<2x8x128xf32> to vector<8x128xf32>
    %c0_3 = arith.constant 0 : index
    %c0_4 = arith.constant 0 : index
    %6 = vector.load %arg3[%c0_3, %c0_4] : memref<8x128xf32, #tpu.memory_space<vmem>>, vector<8x128xf32>
    tpu.vector_store %arg3[%c0_3, %c0_4], %5 {strides = array<i32>} : memref<8x128xf32, #tpu.memory_space<vmem>>, vector<8x128xf32>,
    return
  }
  func.func @transform_0(%arg0: i32) -> (i32, i32) {
    %c0_i32 = arith.constant 0 : i32
    %c0_i32_0 = arith.constant 0 : i32
    return %arg0, %c0_i32 : i32, i32
  }
  func.func @transform_1(%arg0: i32) -> (i32, i32) {
    %c0_i32 = arith.constant 0 : i32
    %c0_i32_0 = arith.constant 0 : i32
    return %arg0, %c0_i32 : i32, i32
  }
  func.func @transform_2(%arg0: i32) -> (i32, i32) {
    %c0_i32 = arith.constant 0 : i32
    %c0_i32_0 = arith.constant 0 : i32
    return %arg0, %c0_i32 : i32, i32
  }
}

</mosaic_0001>

<bundles_post_ra>
// kernel: tpu_custom_call.1
= control target key start
LH: loop header
LB: loop body
LE: loop exit
PB: predicated region body
PF: predicated region fallthrough
CT: control target
= control target key end

     0   :  { %7 = vsyncpa [#allocation3], 0  ;;  %s184_s0 = inlined_call_operand.hbm [shape: f32[16,128], index: 0, kind: input, shape index: {}]   ;;  %s185_s1 = inlined_call_operand.hbm [shape: f32[16,128], index: 1, kind: input, shape index: {}]   ;;  %s186_s2 = inlined_call_operand.hbm [shape: f32[8,128], index: 2, kind: output, shape index: {}]  }
   0x1   :  { %8 = vsyncpa [#allocation6], 0 }
   0x2   :  { %9 = vsyncpa [#allocation4], 0  ;;  %s14_s11 = sshll.u32 %s184_s0, 4  ;;  %s155_s12 = smov [#allocation2]   ;;  %s15_s11 = int_to_ptr.hbm [resolvable:$true] %s14_s11 }
   0x3   :  { %s16_s13 = sshll.u32 %s155_s12, 4  ;;  %s27_s16 = sshll.u32 %s185_s1, 4  ;;  %s17_s13 = int_to_ptr.vmem [resolvable:$true] %s16_s13  ;;  %s28_s16 = int_to_ptr.hbm [resolvable:$true] %s27_s16 }
   0x4   :  { %s156_s17 = smov 128   ;;  %s157_s18 = smov 8  }
   0x5   :  { %22 = dma.hbm_to_vmem [thread:$0]  %s15_s11, 256, %s17_s13, [#allocation3], %s156_s17, %s156_s17, %s157_s18  }
   0x6   :  { %s158_s19 = smov [#allocation5]  }
   0x7   :  { %s29_s20 = sshll.u32 %s158_s19, 4  ;;  %s30_s20 = int_to_ptr.vmem [resolvable:$true] %s29_s20 }
   0x8   :  { %35 = dma.hbm_to_vmem [thread:$0]  %s28_s16, 256, %s30_s20, [#allocation6], %s156_s17, %s156_s17, %s157_s18  }
   0x9   :  { %149 = dma.done.wait [#allocation3], 256  }
   0xa   :  { %150 = vsyncadd [#allocation3], 4294967040 }
   0xb   :  { %151 = dma.done.wait [#allocation6], 256  }
   0xc   :  { %152 = vsyncadd [#allocation6], 4294967040  ;;  %v44_v0 = vld [vmem:[#allocation2] sm:$0xff]  ;;  %v45_v1 = vld [vmem:[#allocation2 + $0x8] sm:$0xff]  ;;  %s159_s0 = smov [#allocation7]   ;;  %s61_s23 = sshll.u32 %s186_s2, 4  ;;  %s62_s23 = int_to_ptr.hbm [resolvable:$true] %s61_s23 }
   0xd   :  { %v46_v2 = vld [vmem:[#allocation5] sm:$0xff]  ;;  %v47_v3 = vld [vmem:[#allocation5 + $0x8] sm:$0xff]  ;;  %s59_s1 = sshll.u32 %s159_s0, 4  ;;  %s60_s1 = int_to_ptr.vmem [resolvable:$true] %s59_s1 }
   0xe   :  { %v48_v4 = vsub.f32 %v44_v0, %v46_v2  ;;  %v49_v5 = vsub.f32 %v45_v1, %v47_v3 }
  0x10   :  { %v50_v6 = vmul.f32 %v48_v4, %v48_v4  ;;  %v51_v7 = vmul.f32 %v49_v5, %v49_v5 }
  0x12   :  { %v52_v8 = vadd.f32 %v51_v7, %v50_v6 }
  0x14   :  { %53 = vst [vmem:[#allocation7] sm:$0xff] %v52_v8 }
  0x15   :  { %64 = dma.vmem_to_hbm [thread:$0]  %s60_s1, 128, %s62_s23, [#allocation4]  }
  0x16   :  { %153 = dma.done.wait [#allocation4], 128  }
  0x17   :  { %154 = vsyncadd [#allocation4], 4294967168 }
  0x18   :  { %69 = vsyncpa [#allocation3], 1 }
  0x19   :  { %70 = vsyncpa [#allocation6], 1 }
  0x1a   :  { %71 = vsyncpa [#allocation4], 1 }

</bundles_post_ra>
